<compile_context>
chip_gen: v7x
topology: tpu7x:2x2x1
jax: 0.10.0
libtpu: 0.0.40
codegen_flags: <defaults>
</compile_context>

<pallas_src>
import jax
import jax.numpy as jnp
import numpy as np
from jax.experimental import pallas as pl
from jax.experimental.pallas import tpu as pltpu

HIDDEN = 64
MAX_TM = 2048          # keeps double-buffered tiles + temporaries < ~8 MiB VMEM
SMALL_BATCH = 512      # below this, plain XLA beats the custom-call overhead


def policy_net_kernel(obs_ref, w1_ref, b1_ref, w2_ref, b2_ref, w3_ref, b3_ref,
                      out_ref):
    """Fused 3-layer MLP on one (tm, in_dim) batch tile.

    (matmul + bias + relu) x2 -> matmul + bias, stored to a (tm, out_dim)
    output block (no lane padding)."""
    x = obs_ref[...]                                               # (tm, in_dim)

    # Layer 1: MXU dot with f32 accumulation; bias/ReLU in f32 on the VPU.
    h1 = jnp.dot(x, w1_ref[...], preferred_element_type=jnp.float32)
    h1 = jnp.maximum(h1 + b1_ref[...], 0.0)                        # (tm, 64) f32

    # Layer 2 (cast activations to the weight dtype so bf16 weights stay on
    # the fast MXU path; no-op when weights are f32).
    h2 = jnp.dot(h1.astype(w2_ref.dtype), w2_ref[...],
                 preferred_element_type=jnp.float32)
    h2 = jnp.maximum(h2 + b2_ref[...], 0.0)                        # (tm, 64) f32

    # Layer 3 (no activation).
    h3 = jnp.dot(h2.astype(w3_ref.dtype), w3_ref[...],
                 preferred_element_type=jnp.float32)
    out_ref[...] = (h3 + b3_ref[...]).astype(out_ref.dtype)        # (tm, out_dim)


def _round_up(x, m):
    return -(-x // m) * m


def policy_net_forward(obs, params, *, tm=2048, use_pallas=None, use_bf16=False):
    """Forward pass. obs: (B, in_dim) float32 -> (B, out_dim) float32.

    use_pallas=None: auto (pure-JAX fast path for small batches).
    use_bf16=True: cast obs + weight matrices to bf16 for the MXU dots
    (epilogues stay f32)."""
    w1, b1, w2, b2, w3, b3 = params
    B, in_dim = obs.shape
    out_dim = w3.shape[1]

    if use_pallas is None:
        use_pallas = B > SMALL_BATCH
    if not use_pallas:
        # Small-batch fast path: XLA fusion is strictly faster than the
        # custom-call launch at this scale.
        return reference_forward(obs, params)

    # --- tile selection -----------------------------------------------------
    # Multiple of 8 sublanes, capped for VMEM (re-derive MAX_TM before pushing
    # past ~4K rows; v7x has only 64 MiB VMEM per TensorCore).
    tm = int(min(tm, MAX_TM, _round_up(B, 8)))
    tm = max(8, (tm // 8) * 8)
    n_tiles = pl.cdiv(B, tm)
    # Make sure the "parallel" batch axis has >= 2 tiles so both TensorCores
    # on v7x get work (harmless on single-TC v5e/v6e).
    if n_tiles == 1 and B > 8:
        tm = _round_up(pl.cdiv(B, 2), 8)
        n_tiles = pl.cdiv(B, tm)

    # --- optional bf16 inputs for the MXU ------------------------------------
    if use_bf16:
        obs_in = obs.astype(jnp.bfloat16)
        w1c = w1.astype(jnp.bfloat16)
        w2c = w2.astype(jnp.bfloat16)
        w3c = w3.astype(jnp.bfloat16)
    else:
        obs_in, w1c, w2c, w3c = obs, w1, w2, w3

    in_itemsize = jnp.dtype(obs_in.dtype).itemsize
    param_bytes = (in_itemsize * (in_dim * HIDDEN + HIDDEN * HIDDEN
                                  + HIDDEN * out_dim)
                   + 4 * (HIDDEN + HIDDEN + out_dim))
    cost = pl.CostEstimate(
        flops=2 * B * (in_dim * HIDDEN + HIDDEN * HIDDEN + HIDDEN * out_dim),
        transcendentals=0,
        bytes_accessed=in_itemsize * B * in_dim + 4 * B * out_dim + param_bytes,
    )

    out = pl.pallas_call(
        policy_net_kernel,
        out_shape=jax.ShapeDtypeStruct((B, out_dim), jnp.float32),
        grid=(n_tiles,),
        in_specs=[
            # Batch-tiled observation input (ragged last tile handled by Pallas).
            pl.BlockSpec((tm, in_dim), lambda i: (i, 0)),
            # Weights / biases: constant index_map -> VMEM-resident across tiles.
            pl.BlockSpec(w1c.shape, lambda i: (0, 0)),
            pl.BlockSpec(b1.shape, lambda i: (0, 0)),
            pl.BlockSpec(w2c.shape, lambda i: (0, 0)),
            pl.BlockSpec(b2.shape, lambda i: (0, 0)),
            pl.BlockSpec(w3c.shape, lambda i: (0, 0)),
            pl.BlockSpec(b3.shape, lambda i: (0, 0)),
        ],
        # Full last dim (= out_dim) on the output block: unpadded HBM writeback.
        out_specs=pl.BlockSpec((tm, out_dim), lambda i: (i, 0)),
        compiler_params=pltpu.CompilerParams(
            dimension_semantics=("parallel",)),
        cost_estimate=cost,
    )(obs_in, w1c, b1, w2c, b2, w3c, b3)

    return out


def orthogonal_init(key, shape, gain):
    """Orthogonal init (same scheme as torch.nn.init.orthogonal_)."""
    init = jax.nn.initializers.orthogonal(scale=gain)
    return init(key, shape, jnp.float32)


def make_params(key, in_dim, hidden, out_dim):
    k1, k2, k3 = jax.random.split(key, 3)
    # Weights stored as (in_features, out_features); biases as (1, out_features).
    w1 = orthogonal_init(k1, (in_dim, hidden), gain=float(np.sqrt(2)))
    b1 = jnp.zeros((1, hidden), jnp.float32)
    w2 = orthogonal_init(k2, (hidden, hidden), gain=float(np.sqrt(2)))
    b2 = jnp.zeros((1, hidden), jnp.float32)
    w3 = orthogonal_init(k3, (hidden, out_dim), gain=0.01)
    b3 = jnp.zeros((1, out_dim), jnp.float32)
    return (w1, b1, w2, b2, w3, b3)


def reference_forward(obs, params):
    """Pure-JAX reference (also the small-batch fast path)."""
    w1, b1, w2, b2, w3, b3 = params
    x = jnp.maximum(obs @ w1 + b1, 0.0)
    x = jnp.maximum(x @ w2 + b2, 0.0)
    return x @ w3 + b3


if __name__ == "__main__":
    # Shapes consistent with the PPO drone setup: obs dim 12 (kinematic state),
    # 4 actions (motor RPMs).
    IN_DIM, OUT_DIM = 12, 4

    key = jax.random.PRNGKey(0)
    k_obs1, k_obs2, k_params = jax.random.split(key, 3)
    params = make_params(k_params, IN_DIM, HIDDEN, OUT_DIM)

    # 1) Small batch forced through the Pallas kernel (single even tile).
    obs_small = jax.random.normal(k_obs1, (8, IN_DIM), jnp.float32)
    out_small = jax.block_until_ready(
        policy_net_forward(obs_small, params, use_pallas=True))
    np.testing.assert_allclose(np.asarray(out_small),
                               np.asarray(reference_forward(obs_small, params)),
                               rtol=1e-5, atol=1e-5)

    # 2) Multi-tile batch with a ragged last tile (200 rows, tm=64 -> 4 tiles).
    obs_big = jax.random.normal(k_obs2, (200, IN_DIM), jnp.float32)
    out_big = jax.block_until_ready(
        policy_net_forward(obs_big, params, tm=64, use_pallas=True))
    np.testing.assert_allclose(np.asarray(out_big),
                               np.asarray(reference_forward(obs_big, params)),
                               rtol=1e-5, atol=1e-5)

    # 3) Auto dispatch (small batch -> pure-JAX fast path) matches the kernel.
    out_auto = jax.block_until_ready(policy_net_forward(obs_small, params))
    np.testing.assert_allclose(np.asarray(out_auto), np.asarray(out_small),
                               rtol=1e-5, atol=1e-5)

    print("KERNEL_OK")
</pallas_src>

<mosaic_0001>
module attributes {stable_mosaic.version = 11 : i64} {
  func.func @policy_net_kernel(%arg0: i32, %arg1: memref<8x12xf32, #tpu.memory_space<vmem>>, %arg2: memref<12x64xf32, #tpu.memory_space<vmem>>, %arg3: memref<1x64xf32, #tpu.memory_space<vmem>>, %arg4: memref<64x64xf32, #tpu.memory_space<vmem>>, %arg5: memref<1x64xf32, #tpu.memory_space<vmem>>, %arg6: memref<64x4xf32, #tpu.memory_space<vmem>>, %arg7: memref<1x4xf32, #tpu.memory_space<vmem>>, %arg8: memref<8x4xf32, #tpu.memory_space<vmem>>) attributes {dimension_semantics = [#tpu.dimension_semantics<parallel>], iteration_bounds = array<i64: 1>, scalar_prefetch = 0 : i64, scratch_operands = 0 : i64, tpu.core_type = #tpu.core_type<tc>, window_params = [{transform_indices = @transform_0, window_bounds = array<i64: 8, 12>}, {pipeline_mode = #tpu.pipeline_mode<synchronous>, transform_indices = @transform_1, window_bounds = array<i64: 12, 64>}, {pipeline_mode = #tpu.pipeline_mode<synchronous>, transform_indices = @transform_2, window_bounds = array<i64: 1, 64>}, {pipeline_mode = #tpu.pipeline_mode<synchronous>, transform_indices = @transform_3, window_bounds = array<i64: 64, 64>}, {pipeline_mode = #tpu.pipeline_mode<synchronous>, transform_indices = @transform_4, window_bounds = array<i64: 1, 64>}, {pipeline_mode = #tpu.pipeline_mode<synchronous>, transform_indices = @transform_5, window_bounds = array<i64: 64, 4>}, {pipeline_mode = #tpu.pipeline_mode<synchronous>, transform_indices = @transform_6, window_bounds = array<i64: 1, 4>}, {transform_indices = @transform_7, window_bounds = array<i64: 8, 4>}]} {
    %c0 = arith.constant 0 : index
    %c0_0 = arith.constant 0 : index
    %0 = vector.load %arg1[%c0, %c0_0] : memref<8x12xf32, #tpu.memory_space<vmem>>, vector<8x12xf32>
    %c0_1 = arith.constant 0 : index
    %c0_2 = arith.constant 0 : index
    %1 = vector.load %arg2[%c0_1, %c0_2] : memref<12x64xf32, #tpu.memory_space<vmem>>, vector<12x64xf32>
    %cst = arith.constant dense<0.000000e+00> : vector<8x64xf32>
    %2 = tpu.matmul %0, %1, %cst {dimension_numbers = #tpu.dot_dimension_numbers<[1], [0], [0], [1], [0, 0, 1, 1], [], []>} : vector<8x12xf32>, vector<12x64xf32>, vector<8x64xf32> -> vector<8x64xf32>
    %c0_3 = arith.constant 0 : index
    %c0_4 = arith.constant 0 : index
    %3 = vector.load %arg3[%c0_3, %c0_4] : memref<1x64xf32, #tpu.memory_space<vmem>>, vector<1x64xf32>
    %4 = vector.broadcast %3 : vector<1x64xf32> to vector<8x64xf32>
    %5 = arith.addf %2, %4 : vector<8x64xf32>
    %cst_5 = arith.constant 0.000000e+00 : f32
    %6 = vector.broadcast %cst_5 : f32 to vector<8x64xf32>
    %7 = arith.maximumf %5, %6 : vector<8x64xf32>
    %c0_6 = arith.constant 0 : index
    %c0_7 = arith.constant 0 : index
    %8 = vector.load %arg4[%c0_6, %c0_7] : memref<64x64xf32, #tpu.memory_space<vmem>>, vector<64x64xf32>
    %cst_8 = arith.constant dense<0.000000e+00> : vector<8x64xf32>
    %9 = tpu.matmul %7, %8, %cst_8 {dimension_numbers = #tpu.dot_dimension_numbers<[1], [0], [0], [1], [0, 0, 1, 1], [], []>} : vector<8x64xf32>, vector<64x64xf32>, vector<8x64xf32> -> vector<8x64xf32>
    %c0_9 = arith.constant 0 : index
    %c0_10 = arith.constant 0 : index
    %10 = vector.load %arg5[%c0_9, %c0_10] : memref<1x64xf32, #tpu.memory_space<vmem>>, vector<1x64xf32>
    %11 = vector.broadcast %10 : vector<1x64xf32> to vector<8x64xf32>
    %12 = arith.addf %9, %11 : vector<8x64xf32>
    %cst_11 = arith.constant 0.000000e+00 : f32
    %13 = vector.broadcast %cst_11 : f32 to vector<8x64xf32>
    %14 = arith.maximumf %12, %13 : vector<8x64xf32>
    %c0_12 = arith.constant 0 : index
    %c0_13 = arith.constant 0 : index
    %15 = vector.load %arg6[%c0_12, %c0_13] : memref<64x4xf32, #tpu.memory_space<vmem>>, vector<64x4xf32>
    %cst_14 = arith.constant dense<0.000000e+00> : vector<8x4xf32>
    %16 = tpu.matmul %14, %15, %cst_14 {dimension_numbers = #tpu.dot_dimension_numbers<[1], [0], [0], [1], [0, 0, 1, 1], [], []>} : vector<8x64xf32>, vector<64x4xf32>, vector<8x4xf32> -> vector<8x4xf32>
    %c0_15 = arith.constant 0 : index
    %c0_16 = arith.constant 0 : index
    %17 = vector.load %arg7[%c0_15, %c0_16] : memref<1x4xf32, #tpu.memory_space<vmem>>, vector<1x4xf32>
    %18 = vector.broadcast %17 : vector<1x4xf32> to vector<8x4xf32>
    %19 = arith.addf %16, %18 : vector<8x4xf32>
    %c0_17 = arith.constant 0 : index
    %c0_18 = arith.constant 0 : index
    %20 = vector.load %arg8[%c0_17, %c0_18] : memref<8x4xf32, #tpu.memory_space<vmem>>, vector<8x4xf32>
    tpu.vector_store %arg8[%c0_17, %c0_18], %19 {strides = array<i32>} : memref<8x4xf32, #tpu.memory_space<vmem>>, vector<8x4xf32>,
    return
  }
  func.func @transform_0(%arg0: i32) -> (i32, i32) {
    %c0_i32 = arith.constant 0 : i32
    %c0_i32_0 = arith.constant 0 : i32
    return %arg0, %c0_i32 : i32, i32
  }
  func.func @transform_1(%arg0: i32) -> (i32, i32) {
    %c0_i32 = arith.constant 0 : i32
    %c0_i32_0 = arith.constant 0 : i32
    %c0_i32_1 = arith.constant 0 : i32
    return %c0_i32, %c0_i32_0 : i32, i32
  }
  func.func @transform_2(%arg0: i32) -> (i32, i32) {
    %c0_i32 = arith.constant 0 : i32
    %c0_i32_0 = arith.constant 0 : i32
    %c0_i32_1 = arith.constant 0 : i32
    return %c0_i32, %c0_i32_0 : i32, i32
  }
  func.func @transform_3(%arg0: i32) -> (i32, i32) {
    %c0_i32 = arith.constant 0 : i32
    %c0_i32_0 = arith.constant 0 : i32
    %c0_i32_1 = arith.constant 0 : i32
    return %c0_i32, %c0_i32_0 : i32, i32
  }
  func.func @transform_4(%arg0: i32) -> (i32, i32) {
    %c0_i32 = arith.constant 0 : i32
    %c0_i32_0 = arith.constant 0 : i32
    %c0_i32_1 = arith.constant 0 : i32
    return %c0_i32, %c0_i32_0 : i32, i32
  }
  func.func @transform_5(%arg0: i32) -> (i32, i32) {
    %c0_i32 = arith.constant 0 : i32
    %c0_i32_0 = arith.constant 0 : i32
    %c0_i32_1 = arith.constant 0 : i32
    return %c0_i32, %c0_i32_0 : i32, i32
  }
  func.func @transform_6(%arg0: i32) -> (i32, i32) {
    %c0_i32 = arith.constant 0 : i32
    %c0_i32_0 = arith.constant 0 : i32
    %c0_i32_1 = arith.constant 0 : i32
    return %c0_i32, %c0_i32_0 : i32, i32
  }
  func.func @transform_7(%arg0: i32) -> (i32, i32) {
    %c0_i32 = arith.constant 0 : i32
    %c0_i32_0 = arith.constant 0 : i32
    return %arg0, %c0_i32 : i32, i32
  }
}

</mosaic_0001>

<bundles_post_ra>
// kernel: tpu_custom_call.1
= control target key start
LH: loop header
LB: loop body
LE: loop exit
PB: predicated region body
PF: predicated region fallthrough
CT: control target
= control target key end

     0   :  { %12 = vsyncpa [#allocation3], 0  ;;  %s446_s24 = smov [#allocation2]   ;;  %s571_s0 = inlined_call_operand.vmem [shape: f32[8,12], index: 0, kind: input, shape index: {}]   ;;  %s572_s1 = inlined_call_operand.hbm [shape: f32[12,64], index: 1, kind: input, shape index: {}]   ;;  %s573_s2 = inlined_call_operand.vmem [shape: f32[1,64], index: 2, kind: input, shape index: {}]   ;;  %s574_s3 = inlined_call_operand.vmem [shape: f32[64,64], index: 3, kind: input, shape index: {}]   ;;  %s575_s4 = inlined_call_operand.vmem [shape: f32[1,64], index: 4, kind: input, shape index: {}]   ;;  %s576_s5 = inlined_call_operand.vmem [shape: f32[64,4], index: 5, kind: input, shape index: {}]   ;;  %s577_s6 = inlined_call_operand.vmem [shape: f32[1,4], index: 6, kind: input, shape index: {}]   ;;  %s578_s7 = inlined_call_operand.vmem [shape: f32[8,4], index: 7, kind: output, shape index: {}]  }
   0x1   :  { %s20_s25 = sshll.u32 %s446_s24, 4  ;;  %s422_s28 = scalar_lea.hbm %s572_s1, 256  ;;  %s21_s25 = int_to_ptr.vmem [resolvable:$true] %s20_s25 }
   0x2   :  { %p423_p0 = scmp.ne.s32.totalorder %s572_s1, %s422_s28  ;;  %p426_p1 = scmp.lt.u32.totalorder %s422_s28, %s572_s1 }
   0x4   :  { %p428_p2 = pnand %p426_p1, %p423_p0 }
   0x6   :  { %431 = shalt.err (!%p428_p2)
}
   0x7   :  { %s432_s10 = scalar_lea.vmem %s21_s25, 256  ;;  %p437_p4 = scmp.lt.s32.totalorder %s21_s25, %s21_s25 }
   0x8   :  { %p433_p3 = scmp.ne.s32.totalorder %s21_s25, %s432_s10  ;;  %p438_p5 = scmp.lt.s32.totalorder %s432_s10, %s432_s10 }
   0xa   :  { %p439_p6 = por %p438_p5, %p437_p4 }
   0xc   :  { %p440_p7 = pnand %p439_p6, %p433_p3 }
   0xe   :  { %443 = shalt.err (!%p440_p7)
}
   0xf   :  { %s447_s11 = smov 128   ;;  %s448_s12 = smov 8  }
  0x10   :  { %26 = dma.hbm_to_vmem [thread:$0]  %s572_s1, 256, %s21_s25, [#allocation3], %s447_s11, %s447_s11, %s448_s12  }
  0x11   :  { %444 = dma.done.wait [#allocation3], 256  }
  0x12   :  { %445 = vsyncadd [#allocation3], 4294967040  ;;  %v449_v0 = vmov 0.0|0.0   ;;  %vm450_vm0 = vmmov 0   ;;  %v451_v1 = vmov 0.0   ;;  %vm54_vm1 = vcmask 1043456  }
  0x13   :  { %387 = vmatprep.subr.bf16.mxu0 %v449_v0  ;;  %391 = vmatprep.subr.bf16.mxu1 %v449_v0  ;;  %v41_v2 = vld [vmem:[#allocation2] sm:$0xff]  ;;  %v42_v3 = vld [vmem:[#allocation2 + $0x8] sm:$0xf]  ;;  %vm452_vm2 = vmmov 1   ;;  %v131_v7 = vld [vmem:[%s574_s3 + $0x10] sm:$0xff]  ;;  %vm50_vm4 = vcmask 97280  }
  0x14   :  { %346 = vmatprep.mubr.msk.f32.mxu0 %vm450_vm0, %v451_v1  ;;  %365 = vmatprep.mubr.msk.f32.mxu1 %vm450_vm0, %v451_v1  ;;  %vm389_vm3 = vmpackc.low %vm54_vm1, %vm452_vm2  ;;  %v388_v4 = vpack.c.bf16 %v42_v3, %v41_v2  ;;  %v129_v5 = vld [vmem:[%s574_s3] sm:$0xff]  ;;  %v130_v6 = vld [vmem:[%s574_s3 + $0x8] sm:$0xff]  ;;  %vm144_vm5 = vcmask 523264   ;;  %vm307_vm6 = vcmask 31744  }
  0x15   :  { %v392_v8 = vpack.c.bf16 %v130_v6, %v129_v5  ;;  %v132_v9 = vld [vmem:[%s574_s3 + $0x18] sm:$0xff]  ;;  %v40_v10 = vld [vmem:[%s571_s0] sm:$0xff]  ;;  %v134_v13 = vld [vmem:[%s574_s3 + $0x28] sm:$0xff] }
  0x16   :  { %390 = vmatpush3.bf16.msk.msra.mxu0 %vm389_vm3, %v388_v4  ;;  %v395_v11 = vpack.c.bf16 %v132_v9, %v131_v7  ;;  %v133_v12 = vld [vmem:[%s574_s3 + $0x20] sm:$0xff]  ;;  %v135_v15 = vld [vmem:[%s574_s3 + $0x30] sm:$0xff]  ;;  %v136_v16 = vld [vmem:[%s574_s3 + $0x38] sm:$0xff] }
  0x17   :  { %393 = vmatpush3.bf16.msra.mxu1 %v392_v8  ;;  %403 = vmatprep.subr.bf16.mxu0 %v449_v0  ;;  %v398_v14 = vpack.c.bf16 %v134_v13, %v133_v12  ;;  %v401_v17 = vpack.c.bf16 %v136_v16, %v135_v15  ;;  %v219_v18 = vld [vmem:[%s576_s5] sm:$0xff]  ;;  %v220_v19 = vld [vmem:[%s576_s5 + $0x8] sm:$0xff]  ;;  %v221_v20 = vld [vmem:[%s576_s5 + $0x10] sm:$0xff] }
  0x18   :  { %394 = vmatprep.subr.bf16.mxu1 %v449_v0  ;;  %v404_v21 = vpack.c.bf16 %v220_v19, %v219_v18  ;;  %v222_v22 = vld [vmem:[%s576_s5 + $0x18] sm:$0xff]  ;;  %v223_v24 = vld [vmem:[%s576_s5 + $0x20] sm:$0xff]  ;;  %v224_v25 = vld [vmem:[%s576_s5 + $0x28] sm:$0xff] }
  0x19   :  { %347 = vmatmul.mubr.msk.f32.vlgmr.msra.gmra.mrb[0].mxu0 %vm50_vm4, %v40_v10  ;;  %v407_v23 = vpack.c.bf16 %v222_v22, %v221_v20  ;;  %v410_v26 = vpack.c.bf16 %v224_v25, %v223_v24  ;;  %v314_v27 = vld [vmem:[%s573_s2] ss:$0 sm:$0xff]  ;;  %v225_v32 = vld [vmem:[%s576_s5 + $0x30] sm:$0xff]  ;;  %v226_v33 = vld [vmem:[%s576_s5 + $0x38] sm:$0xff] }
  0x1a   :  { %384 = vmatprep.mubr.msk.f32.mxu0 %vm450_vm0, %v451_v1  ;;  %405 = vmatpush3.bf16.msra.mxu0 %v404_v21  ;;  %v413_v34 = vpack.c.bf16 %v226_v33, %v225_v32  ;;  %v317_v35 = vld [vmem:[%s575_s4] ss:$0 sm:$0xff] }
  0x1b   :  { %396 = vmatpush3.bf16.msra.mxu1 %v395_v11  ;;  %406 = vmatprep.subr.bf16.mxu0 %v449_v0  ;;  %v319_v40 = vld [vmem:[%s577_s6] ss:$0 sm:$0xff] }
  0x1c   :  { %397 = vmatprep.subr.bf16.mxu1 %v449_v0 }
  0x1e   :  { %408 = vmatpush3.bf16.msra.mxu0 %v407_v23 }
  0x1f   :  { %399 = vmatpush3.bf16.msra.mxu1 %v398_v14  ;;  %409 = vmatprep.subr.bf16.mxu0 %v449_v0 }
  0x20   :  { %400 = vmatprep.subr.bf16.mxu1 %v449_v0 }
  0x22   :  { %411 = vmatpush3.bf16.msra.mxu0 %v410_v26 }
  0x23   :  { %402 = vmatpush3.bf16.msra.mxu1 %v401_v17  ;;  %412 = vmatprep.subr.bf16.mxu0 %v449_v0 }
  0x26   :  { %414 = vmatpush3.bf16.msra.mxu0 %v413_v34 }
  0xec   :  { %v124_v28 = vpop.f32.mrb[0].mxu0 }
  0xed   :  { %v125_v29 = vadd.f32 %v314_v27, %v124_v28  ;;  %v348_v30 = vpop.f32.mrb[1].mxu0 }
  0xef   :  { %v128_v31 = vmax.f32 %v125_v29, 0.0 }
  0xf1   :  { %366 = vmatmul.mubr.msk.f32.vlgmr.msra.gmra.mrb[0].mxu1 %vm144_vm5, %v128_v31 }
 0x1c4   :  { %v214_v36 = vpop.f32.mrb[0].mxu1 }
 0x1c5   :  { %v215_v37 = vadd.f32 %v317_v35, %v214_v36  ;;  %v367_v38 = vpop.f32.mrb[1].mxu1 }
 0x1c7   :  { %v218_v39 = vmax.f32 %v215_v37, 0.0 }
 0x1c9   :  { %385 = vmatmul.mubr.msk.f32.vlgmr.msra.gmra.mrb[2].mxu0 %vm144_vm5, %v218_v39 }
 0x29c   :  { %v303_v41 = vpop.f32.mrb[2].mxu0 }
 0x29d   :  { %v304_v42 = vadd.f32 %v319_v40, %v303_v41  ;;  %v386_v43 = vpop.f32.mrb[3].mxu0 }
 0x29f   :  { %308 = vst.msk [vmem:[%s578_s7] sm:$0xff] %vm307_vm6, %v304_v42 }
 0x2a0   :  { %313 = vsyncpa [#allocation3], 1 }

</bundles_post_ra>
